<compile_context>
chip_gen: v7x
topology: tpu7x:2x2x1
jax: 0.10.0
libtpu: 0.0.40
codegen_flags: <defaults>
</compile_context>

<pallas_src>
import numpy as np
import jax
import jax.numpy as jnp
from jax.experimental import pallas as pl
from jax.experimental.pallas import tpu as pltpu

PI = 3.14159265359
LANES = 128


def _make_mixfeat_kernel(one_plus_a, b, group):
    """Build a kernel closed over the mixing scalars and the group size."""

    def kernel(perm_ref, x_ref, x_hbm_ref, o_ref, fx_buf, sems):
        i = pl.program_id(0)
        base = i * group

        # Issue `group` row-gather DMAs: fx_buf[g] <- x_hbm[perm[base + g]]
        copies = []
        for g in range(group):                      # static unroll, group small
            p = perm_ref[base + g]
            cp = pltpu.make_async_copy(x_hbm_ref.at[p], fx_buf.at[g], sems.at[g])
            cp.start()
            copies.append(cp)

        # Overlap: compute the identity term while the gathers are in flight.
        o_ref[...] = one_plus_a * x_ref[...]

        for cp in copies:
            cp.wait()
        o_ref[...] = o_ref[...] + b * fx_buf[...]

    return kernel


def _pick_group(n, row_bytes, target_bytes=1 << 20, max_g=8):
    """Largest divisor of n (<= max_g) keeping the per-step block <= target."""
    g = 1
    for cand in range(1, min(n, max_g) + 1):
        if n % cand == 0 and cand * row_bytes <= max(target_bytes, row_bytes):
            g = cand
    return g


def mixfeat_forward(x, sigma, *, training=True, np_seed=0):
    """x: float32[N, C, H, W] (NCHW).  Returns same shape/dtype."""
    if not training:
        return x

    N, C, H, W = x.shape
    F = C * H * W

    # Deterministic draws matching the torch module's host-side numpy RNG.
    # TODO(synk): under jax.jit these become compile-time constants; use
    # pltpu.prng_* or a jax.random key argument for fresh per-step randomness.
    rng = np.random.default_rng(np_seed)
    r = rng.normal(0.0, sigma)
    theta = rng.uniform(-PI, PI)
    a = float(r * np.cos(theta))
    b = float(r * np.sin(theta))
    perm_np = rng.permutation(N).astype(np.int32)

    if F % LANES != 0:
        # No clean lane-dense tiling; let XLA fuse the tiny gather + FMA.
        perm = jnp.asarray(perm_np)
        return ((1.0 + a) * x + b * jnp.take(x, perm, axis=0)).astype(x.dtype)

    S = F // LANES
    x3 = x.reshape(N, S, LANES)
    itemsize = np.dtype(x.dtype).itemsize
    row_bytes = S * LANES * itemsize

    G = _pick_group(N, row_bytes)
    grid = (N // G,)

    kernel = _make_mixfeat_kernel(1.0 + a, b, G)

    grid_spec = pltpu.PrefetchScalarGridSpec(
        num_scalar_prefetch=1,                 # perm -> SMEM
        grid=grid,
        in_specs=[
            # x rows for this group (auto-pipelined by Pallas).
            pl.BlockSpec((G, S, LANES), lambda i, perm: (i, 0, 0)),
            # raw HBM ref of x for the manual permuted-row gathers.
            pl.BlockSpec(memory_space=pl.ANY),
        ],
        out_specs=pl.BlockSpec((G, S, LANES), lambda i, perm: (i, 0, 0)),
        scratch_shapes=[
            pltpu.VMEM((G, S, LANES), x.dtype),      # gathered fx rows
            pltpu.SemaphoreType.DMA((G,)),
        ],
    )

    bytes_accessed = 3 * N * F * itemsize            # 2 reads of x + 1 write
    out3 = pl.pallas_call(
        kernel,
        out_shape=jax.ShapeDtypeStruct((N, S, LANES), x.dtype),
        grid_spec=grid_spec,
        compiler_params=pltpu.CompilerParams(
            dimension_semantics=("parallel",),       # groups are independent
        ),
        cost_estimate=pl.CostEstimate(
            flops=3 * N * F, transcendentals=0, bytes_accessed=bytes_accessed),
    )(jnp.asarray(perm_np), x3, x3)

    # TODO(synk): add a custom_vjp if gradients through MixFeat are needed
    # (PyTorch applies the inverse-permuted mix in the backward pass).
    return out3.reshape(N, C, H, W)


if __name__ == "__main__":
    sigma = 0.2
    key = jax.random.PRNGKey(0)
    x = jax.random.normal(key, (2, 4, 16, 16), dtype=jnp.float32)  # NCHW

    out = mixfeat_forward(x, sigma, training=True, np_seed=0)
    out = jax.block_until_ready(out)

    # Reference check (pure JAX / numpy) with the same deterministic draws.
    rng = np.random.default_rng(0)
    r = rng.normal(0.0, sigma)
    theta = rng.uniform(-PI, PI)
    a = float(r * np.cos(theta))
    b = float(r * np.sin(theta))
    perm = rng.permutation(2)
    ref = (1.0 + a) * x + b * x[jnp.asarray(perm)]
    np.testing.assert_allclose(np.asarray(out), np.asarray(ref), rtol=1e-6, atol=1e-6)

    # Eval mode is identity.
    out_eval = mixfeat_forward(x, sigma, training=False)
    np.testing.assert_allclose(np.asarray(out_eval), np.asarray(x))

    print("KERNEL_OK")
</pallas_src>

<mosaic_0001>
module attributes {stable_mosaic.version = 11 : i64} {
  func.func @kernel(%arg0: i32, %arg1: memref<2xi32, #tpu.memory_space<smem>>, %arg2: memref<2x8x128xf32, #tpu.memory_space<vmem>>, %arg3: memref<2x8x128xf32, #tpu.memory_space<any>>, %arg4: memref<2x8x128xf32, #tpu.memory_space<vmem>>, %arg5: memref<2x8x128xf32, #tpu.memory_space<vmem>>, %arg6: memref<2x!tpu.dma_semaphore, #tpu.memory_space<semaphore_mem>>) attributes {dimension_semantics = [#tpu.dimension_semantics<parallel>], iteration_bounds = array<i64: 1>, scalar_prefetch = 1 : i64, scratch_operands = 2 : i64, tpu.core_type = #tpu.core_type<tc>, window_params = [{transform_indices = @transform_0, window_bounds = array<i64: 2, 8, 128>}, {}, {transform_indices = @transform_2, window_bounds = array<i64: 2, 8, 128>}]} {
    %c2_i32 = arith.constant 2 : i32
    %0 = arith.muli %arg0, %c2_i32 : i32
    %c0_i32 = arith.constant 0 : i32
    %1 = arith.addi %0, %c0_i32 : i32
    %2 = arith.index_cast %1 : i32 to index
    %3 = memref.load %arg1[%2] : memref<2xi32, #tpu.memory_space<smem>>
    %c0_i32_0 = arith.constant 0 : i32
    %c0_i32_1 = arith.constant 0 : i32
    %c0_i32_2 = arith.constant 0 : i32
    %c0_i32_3 = arith.constant 0 : i32
    %4 = tpu.memref_slice %arg3[%3, %c0_i32_2, %c0_i32_3] : memref<2x8x128xf32, #tpu.memory_space<any>> -> memref<1x8x128xf32, #tpu.memory_space<any>>
    %5 = tpu.memref_squeeze %4 : memref<1x8x128xf32, #tpu.memory_space<any>> -> memref<8x128xf32, #tpu.memory_space<any>>
    %c0_i32_4 = arith.constant 0 : i32
    %c0_i32_5 = arith.constant 0 : i32
    %6 = tpu.memref_slice %arg5[%c0_i32_0, %c0_i32_4, %c0_i32_5] : memref<2x8x128xf32, #tpu.memory_space<vmem>> -> memref<1x8x128xf32, #tpu.memory_space<vmem>>
    %7 = tpu.memref_squeeze %6 : memref<1x8x128xf32, #tpu.memory_space<vmem>> -> memref<8x128xf32, #tpu.memory_space<vmem>>
    %8 = tpu.memref_slice %arg6[%c0_i32_1] : memref<2x!tpu.dma_semaphore, #tpu.memory_space<semaphore_mem>> -> memref<1x!tpu.dma_semaphore, #tpu.memory_space<semaphore_mem>>
    %9 = tpu.memref_squeeze %8 : memref<1x!tpu.dma_semaphore, #tpu.memory_space<semaphore_mem>> -> memref<!tpu.dma_semaphore, #tpu.memory_space<semaphore_mem>>
    tpu.enqueue_dma source(%5 : memref<8x128xf32, #tpu.memory_space<any>>) target(%7 : memref<8x128xf32, #tpu.memory_space<vmem>>) target_semaphore(%9 : memref<!tpu.dma_semaphore, #tpu.memory_space<semaphore_mem>>)
    %c1_i32 = arith.constant 1 : i32
    %10 = arith.addi %0, %c1_i32 : i32
    %11 = arith.index_cast %10 : i32 to index
    %12 = memref.load %arg1[%11] : memref<2xi32, #tpu.memory_space<smem>>
    %c1_i32_6 = arith.constant 1 : i32
    %c1_i32_7 = arith.constant 1 : i32
    %c0_i32_8 = arith.constant 0 : i32
    %c0_i32_9 = arith.constant 0 : i32
    %13 = tpu.memref_slice %arg3[%12, %c0_i32_8, %c0_i32_9] : memref<2x8x128xf32, #tpu.memory_space<any>> -> memref<1x8x128xf32, #tpu.memory_space<any>>
    %14 = tpu.memref_squeeze %13 : memref<1x8x128xf32, #tpu.memory_space<any>> -> memref<8x128xf32, #tpu.memory_space<any>>
    %c0_i32_10 = arith.constant 0 : i32
    %c0_i32_11 = arith.constant 0 : i32
    %15 = tpu.memref_slice %arg5[%c1_i32_6, %c0_i32_10, %c0_i32_11] : memref<2x8x128xf32, #tpu.memory_space<vmem>> -> memref<1x8x128xf32, #tpu.memory_space<vmem>>
    %16 = tpu.memref_squeeze %15 : memref<1x8x128xf32, #tpu.memory_space<vmem>> -> memref<8x128xf32, #tpu.memory_space<vmem>>
    %17 = tpu.memref_slice %arg6[%c1_i32_7] : memref<2x!tpu.dma_semaphore, #tpu.memory_space<semaphore_mem>> -> memref<1x!tpu.dma_semaphore, #tpu.memory_space<semaphore_mem>>
    %18 = tpu.memref_squeeze %17 : memref<1x!tpu.dma_semaphore, #tpu.memory_space<semaphore_mem>> -> memref<!tpu.dma_semaphore, #tpu.memory_space<semaphore_mem>>
    tpu.enqueue_dma source(%14 : memref<8x128xf32, #tpu.memory_space<any>>) target(%16 : memref<8x128xf32, #tpu.memory_space<vmem>>) target_semaphore(%18 : memref<!tpu.dma_semaphore, #tpu.memory_space<semaphore_mem>>)
    %c0 = arith.constant 0 : index
    %c0_12 = arith.constant 0 : index
    %c0_13 = arith.constant 0 : index
    %19 = vector.load %arg2[%c0, %c0_12, %c0_13] : memref<2x8x128xf32, #tpu.memory_space<vmem>>, vector<2x8x128xf32>
    %cst = arith.constant 1.00311816 : f32
    %20 = vector.broadcast %cst : f32 to vector<2x8x128xf32>
    %21 = arith.mulf %20, %19 : vector<2x8x128xf32>
    %c0_14 = arith.constant 0 : index
    %c0_15 = arith.constant 0 : index
    %c0_16 = arith.constant 0 : index
    %22 = vector.load %arg4[%c0_14, %c0_15, %c0_16] : memref<2x8x128xf32, #tpu.memory_space<vmem>>, vector<2x8x128xf32>
    tpu.vector_store %arg4[%c0_14, %c0_15, %c0_16], %21 {strides = array<i32>} : memref<2x8x128xf32, #tpu.memory_space<vmem>>, vector<2x8x128xf32>,
    %c0_i32_17 = arith.constant 0 : i32
    %c0_i32_18 = arith.constant 0 : i32
    %c0_i32_19 = arith.constant 0 : i32
    %c0_i32_20 = arith.constant 0 : i32
    %23 = tpu.memref_slice %arg3[%3, %c0_i32_19, %c0_i32_20] : memref<2x8x128xf32, #tpu.memory_space<any>> -> memref<1x8x128xf32, #tpu.memory_space<any>>
    %24 = tpu.memref_squeeze %23 : memref<1x8x128xf32, #tpu.memory_space<any>> -> memref<8x128xf32, #tpu.memory_space<any>>
    %c0_i32_21 = arith.constant 0 : i32
    %c0_i32_22 = arith.constant 0 : i32
    %25 = tpu.memref_slice %arg5[%c0_i32_17, %c0_i32_21, %c0_i32_22] : memref<2x8x128xf32, #tpu.memory_space<vmem>> -> memref<1x8x128xf32, #tpu.memory_space<vmem>>
    %26 = tpu.memref_squeeze %25 : memref<1x8x128xf32, #tpu.memory_space<vmem>> -> memref<8x128xf32, #tpu.memory_space<vmem>>
    %27 = tpu.memref_slice %arg6[%c0_i32_18] : memref<2x!tpu.dma_semaphore, #tpu.memory_space<semaphore_mem>> -> memref<1x!tpu.dma_semaphore, #tpu.memory_space<semaphore_mem>>
    %28 = tpu.memref_squeeze %27 : memref<1x!tpu.dma_semaphore, #tpu.memory_space<semaphore_mem>> -> memref<!tpu.dma_semaphore, #tpu.memory_space<semaphore_mem>>
    tpu.wait_dma2 semaphore(%28 : memref<!tpu.dma_semaphore, #tpu.memory_space<semaphore_mem>>) src(%24 : memref<8x128xf32, #tpu.memory_space<any>>) dst(%26 : memref<8x128xf32, #tpu.memory_space<vmem>>)
    %c1_i32_23 = arith.constant 1 : i32
    %c1_i32_24 = arith.constant 1 : i32
    %c0_i32_25 = arith.constant 0 : i32
    %c0_i32_26 = arith.constant 0 : i32
    %29 = tpu.memref_slice %arg3[%12, %c0_i32_25, %c0_i32_26] : memref<2x8x128xf32, #tpu.memory_space<any>> -> memref<1x8x128xf32, #tpu.memory_space<any>>
    %30 = tpu.memref_squeeze %29 : memref<1x8x128xf32, #tpu.memory_space<any>> -> memref<8x128xf32, #tpu.memory_space<any>>
    %c0_i32_27 = arith.constant 0 : i32
    %c0_i32_28 = arith.constant 0 : i32
    %31 = tpu.memref_slice %arg5[%c1_i32_23, %c0_i32_27, %c0_i32_28] : memref<2x8x128xf32, #tpu.memory_space<vmem>> -> memref<1x8x128xf32, #tpu.memory_space<vmem>>
    %32 = tpu.memref_squeeze %31 : memref<1x8x128xf32, #tpu.memory_space<vmem>> -> memref<8x128xf32, #tpu.memory_space<vmem>>
    %33 = tpu.memref_slice %arg6[%c1_i32_24] : memref<2x!tpu.dma_semaphore, #tpu.memory_space<semaphore_mem>> -> memref<1x!tpu.dma_semaphore, #tpu.memory_space<semaphore_mem>>
    %34 = tpu.memref_squeeze %33 : memref<1x!tpu.dma_semaphore, #tpu.memory_space<semaphore_mem>> -> memref<!tpu.dma_semaphore, #tpu.memory_space<semaphore_mem>>
    tpu.wait_dma2 semaphore(%34 : memref<!tpu.dma_semaphore, #tpu.memory_space<semaphore_mem>>) src(%30 : memref<8x128xf32, #tpu.memory_space<any>>) dst(%32 : memref<8x128xf32, #tpu.memory_space<vmem>>)
    %c0_29 = arith.constant 0 : index
    %c0_30 = arith.constant 0 : index
    %c0_31 = arith.constant 0 : index
    %35 = vector.load %arg4[%c0_29, %c0_30, %c0_31] : memref<2x8x128xf32, #tpu.memory_space<vmem>>, vector<2x8x128xf32>
    %c0_32 = arith.constant 0 : index
    %c0_33 = arith.constant 0 : index
    %c0_34 = arith.constant 0 : index
    %36 = vector.load %arg5[%c0_32, %c0_33, %c0_34] : memref<2x8x128xf32, #tpu.memory_space<vmem>>, vector<2x8x128xf32>
    %cst_35 = arith.constant -0.0249519609 : f32
    %37 = vector.broadcast %cst_35 : f32 to vector<2x8x128xf32>
    %38 = arith.mulf %37, %36 : vector<2x8x128xf32>
    %39 = arith.addf %35, %38 : vector<2x8x128xf32>
    %c0_36 = arith.constant 0 : index
    %c0_37 = arith.constant 0 : index
    %c0_38 = arith.constant 0 : index
    %40 = vector.load %arg4[%c0_36, %c0_37, %c0_38] : memref<2x8x128xf32, #tpu.memory_space<vmem>>, vector<2x8x128xf32>
    tpu.vector_store %arg4[%c0_36, %c0_37, %c0_38], %39 {strides = array<i32>} : memref<2x8x128xf32, #tpu.memory_space<vmem>>, vector<2x8x128xf32>,
    return
  }
  func.func @transform_0(%arg0: i32, %arg1: memref<2xi32, #tpu.memory_space<smem>>) -> (i32, i32, i32) {
    %c0_i32 = arith.constant 0 : i32
    %c0_i32_0 = arith.constant 0 : i32
    %c0_i32_1 = arith.constant 0 : i32
    return %arg0, %c0_i32, %c0_i32_0 : i32, i32, i32
  }
  func.func @transform_2(%arg0: i32, %arg1: memref<2xi32, #tpu.memory_space<smem>>) -> (i32, i32, i32) {
    %c0_i32 = arith.constant 0 : i32
    %c0_i32_0 = arith.constant 0 : i32
    %c0_i32_1 = arith.constant 0 : i32
    return %arg0, %c0_i32, %c0_i32_0 : i32, i32, i32
  }
}

</mosaic_0001>

<bundles_post_ra>
// kernel: tpu_custom_call.1
= control target key start
LH: loop header
LB: loop body
LE: loop exit
PB: predicated region body
PF: predicated region fallthrough
CT: control target
= control target key end

     0   :  { %s348_s0 = inlined_call_operand.hbm [shape: s32[2], index: 0, kind: input, shape index: {}]   ;;  %s349_s1 = inlined_call_operand.hbm [shape: f32[2,8,128], index: 1, kind: input, shape index: {}]   ;;  %s350_s2 = inlined_call_operand.hbm [shape: f32[2,8,128], index: 2, kind: input, shape index: {}]   ;;  %s351_s3 = inlined_call_operand.hbm [shape: f32[2,8,128], index: 3, kind: output, shape index: {}]  }
   0x1   :  { %s134_s14 = scalar_lea.hbm %s348_s0, 16 }
   0x2   :  { %p135_p0 = scmp.ne.s32.totalorder %s348_s0, %s134_s14  ;;  %p138_p1 = scmp.lt.u32.totalorder %s134_s14, %s348_s0 }
   0x4   :  { %p140_p2 = pnand %p138_p1, %p135_p0 }
   0x6   :  { %143 = shalt.err (!%p140_p2)  }
   0x7   :  { %s246_s19 = smov [#allocation5]  }
   0x8   :  { %9 = dma.hbm_to_smem %s348_s0, 16, %s246_s19, [#allocation4] }
   0x9   :  { %236 = dma.done.wait [#allocation4], 16 }
   0xa   :  { %237 = vsyncadd [#allocation4], 4294967280 }
   0xb   :  { %11 = sfence }
   0xc   :  { %12 = vsyncpa [#allocation7], 0 }
   0xd   :  { %13 = vsyncpa [#allocation8], 0  ;;  %s247_s22 = smov [#allocation6]   ;;  %s144_s26 = scalar_lea.hbm %s349_s1, 256 }
   0xe   :  { %s19_s23 = sshll.u32 %s247_s22, 4  ;;  %p145_p3 = scmp.ne.s32.totalorder %s349_s1, %s144_s26  ;;  %s20_s23 = int_to_ptr.vmem [resolvable:$true] %s19_s23 }
   0xf   :  { %p148_p4 = scmp.lt.u32.totalorder %s144_s26, %s349_s1 }
  0x11   :  { %p150_p5 = pnand %p148_p4, %p145_p3 }
  0x13   :  { %153 = shalt.err (!%p150_p5)
}
  0x14   :  { %s154_s0 = scalar_lea.vmem %s20_s23, 256  ;;  %p159_p7 = scmp.lt.s32.totalorder %s20_s23, %s20_s23 }
  0x15   :  { %p155_p6 = scmp.ne.s32.totalorder %s20_s23, %s154_s0  ;;  %p160_p8 = scmp.lt.s32.totalorder %s154_s0, %s154_s0 }
  0x17   :  { %p161_p9 = por %p160_p8, %p159_p7 }
  0x19   :  { %p162_p10 = pnand %p161_p9, %p155_p6 }
  0x1b   :  { %165 = shalt.err (!%p162_p10)
}
  0x1c   :  { %s248_s4 = smov 128   ;;  %s249_s5 = smov 8  }
  0x1d   :  { %25 = dma.hbm_to_vmem [thread:$0]  %s349_s1, 256, %s20_s23, [#allocation7], %s248_s4, %s248_s4, %s249_s5  }
  0x1e   :  { %238 = dma.done.wait [#allocation7], 256  }
  0x1f   :  { %239 = vsyncadd [#allocation7], 4294967040  ;;  %s30_s8 = sld [smem:[#allocation5]]  ;;  %s300_s9 = sld [smem:[#allocation5 + $0x1]]  ;;  %v63_v0 = vld [vmem:[#allocation6] sm:$0xff]  ;;  %v64_v1 = vld [vmem:[#allocation6 + $0x8] sm:$0xff] }
  0x20   :  { %s250_s10 = smov [#allocation2]   ;;  %s251_s12 = smov [#allocation2 + $0x8]   ;;  %v65_v2 = vmul.f32 1.0031182, %v63_v0  ;;  %v66_v3 = vmul.f32 1.0031182, %v64_v1 }
  0x21   :  { %s41_s11 = sshll.u32 %s250_s10, 4  ;;  %s59_s13 = sshll.u32 %s251_s12, 4  ;;  %s302_s11 = int_to_ptr.vmem [resolvable:$true] %s41_s11  ;;  %s304_s13 = int_to_ptr.vmem [resolvable:$true] %s59_s13 }
  0x22   :  { %s168_s21 = scalar_lea.hbm %s350_s2, 256 }
  0x25   :  { %s125_s14 = sshll.u32 %s30_s8, 7  ;;  %s126_s17 = sshll.u32 %s300_s9, 7 }
  0x26   :  { %s33_s1 = scalar_lea.hbm %s350_s2, %s125_s14 }
  0x27   :  { %s166_s18 = scalar_lea.hbm %s33_s1, 128  ;;  %p169_p12 = scmp.lt.u32.totalorder %s33_s1, %s350_s2 }
  0x28   :  { %p167_p11 = scmp.ne.s32.totalorder %s33_s1, %s166_s18  ;;  %p170_p13 = scmp.lt.u32.totalorder %s168_s21, %s166_s18 }
  0x29   :  { %p172_p1 = scmp.lt.u32.totalorder %s166_s18, %s33_s1 }
  0x2a   :  { %p171_p0 = por %p170_p13, %p169_p12 }
  0x2c   :  { %p173_p2 = por %p172_p1, %p171_p0 }
  0x2e   :  { %p174_p3 = pnand %p173_p2, %p167_p11 }
  0x30   :  { %177 = shalt.err (!%p174_p3)  }
  0x31   :  { %s178_s24 = scalar_lea.vmem %s302_s11, 128  ;;  %s182_s25 = scalar_lea.vmem %s302_s11, 256 }
  0x32   :  { %p179_p4 = scmp.ne.s32.totalorder %s302_s11, %s178_s24  ;;  %p183_p5 = scmp.lt.s32.totalorder %s302_s11, %s302_s11 }
  0x33   :  { %p184_p6 = scmp.lt.s32.totalorder %s182_s25, %s178_s24 }
  0x35   :  { %p185_p7 = por %p184_p6, %p183_p5 }
  0x37   :  { %p186_p8 = pnand %p185_p7, %p179_p4 }
  0x39   :  { %189 = shalt.err (!%p186_p8)  }
  0x3a   :  { %44 = dma.hbm_to_vmem [thread:$0]  %s33_s1, 128, %s302_s11, [#allocation3]  ;;  %67 = vst [vmem:[#allocation9] sm:$0xff] %v65_v2  ;;  %68 = vst [vmem:[#allocation9 + $0x8] sm:$0xff] %v66_v3 }
  0x3b   :  { %s49_s28 = scalar_lea.hbm %s350_s2, %s126_s17 }
  0x3c   :  { %s190_s29 = scalar_lea.hbm %s49_s28, 128  ;;  %p193_p10 = scmp.lt.u32.totalorder %s49_s28, %s350_s2 }
  0x3d   :  { %p191_p9 = scmp.ne.s32.totalorder %s49_s28, %s190_s29  ;;  %p194_p11 = scmp.lt.u32.totalorder %s168_s21, %s190_s29 }
  0x3e   :  { %p196_p13 = scmp.lt.u32.totalorder %s190_s29, %s49_s28 }
  0x3f   :  { %p195_p12 = por %p194_p11, %p193_p10 }
  0x41   :  { %p197_p0 = por %p196_p13, %p195_p12 }
  0x43   :  { %p198_p1 = pnand %p197_p0, %p191_p9 }
  0x45   :  { %201 = shalt.err (!%p198_p1)  }
  0x46   :  { %s202_s6 = scalar_lea.vmem %s304_s13, 128  ;;  %p207_p3 = scmp.lt.s32.totalorder %s304_s13, %s302_s11 }
  0x47   :  { %p203_p2 = scmp.ne.s32.totalorder %s304_s13, %s202_s6  ;;  %p208_p4 = scmp.lt.s32.totalorder %s182_s25, %s202_s6 }
  0x49   :  { %p209_p5 = por %p208_p4, %p207_p3 }
  0x4b   :  { %p210_p6 = pnand %p209_p5, %p203_p2 }
  0x4d   :  { %213 = shalt.err (!%p210_p6)  }
  0x4e   :  { %62 = dma.hbm_to_vmem [thread:$0]  %s49_s28, 128, %s304_s13, [#allocation3 + $0x1] }
  0x4f   :  { %240 = dma.done.wait [#allocation3], 128 }
  0x50   :  { %241 = vsyncadd [#allocation3], 4294967168 }
  0x51   :  { %242 = dma.done.wait [#allocation3 + $0x1], 128 }
  0x52   :  { %243 = vsyncadd [#allocation3 + $0x1], 4294967168  ;;  %v74_v4 = vld [vmem:[#allocation9] sm:$0xff]  ;;  %v75_v7 = vld [vmem:[#allocation9 + $0x8] sm:$0xff]  ;;  %s252_s2 = smov [#allocation9]  }
  0x53   :  { %v76_v5 = vld [vmem:[#allocation2] sm:$0xff]  ;;  %v77_v8 = vld [vmem:[#allocation2 + $0x8] sm:$0xff]  ;;  %s89_s7 = sshll.u32 %s252_s2, 4  ;;  %s90_s7 = int_to_ptr.vmem [resolvable:$true] %s89_s7 }
  0x54   :  { %v78_v6 = vmul.f32 -0.02495196, %v76_v5  ;;  %v79_v9 = vmul.f32 -0.02495196, %v77_v8  ;;  %s214_s8 = scalar_lea.vmem %s90_s7, 256  ;;  %p219_p8 = scmp.lt.s32.totalorder %s90_s7, %s90_s7 }
  0x55   :  { %p215_p7 = scmp.ne.s32.totalorder %s90_s7, %s214_s8  ;;  %p220_p9 = scmp.lt.s32.totalorder %s214_s8, %s214_s8 }
  0x56   :  { %v80_v10 = vadd.f32 %v78_v6, %v74_v4  ;;  %v81_v11 = vadd.f32 %v79_v9, %v75_v7 }
  0x57   :  { %p221_p10 = por %p220_p9, %p219_p8 }
  0x58   :  { %82 = vst [vmem:[#allocation9] sm:$0xff] %v80_v10  ;;  %83 = vst [vmem:[#allocation9 + $0x8] sm:$0xff] %v81_v11 }
  0x59   :  { %p222_p11 = pnand %p221_p10, %p215_p7 }
  0x5b   :  { %225 = shalt.err (!%p222_p11)
}
  0x5c   :  { %s226_s11 = scalar_lea.hbm %s351_s3, 256 }
  0x5d   :  { %p227_p12 = scmp.ne.s32.totalorder %s351_s3, %s226_s11  ;;  %p230_p13 = scmp.lt.u32.totalorder %s226_s11, %s351_s3 }
  0x5f   :  { %p232_p0 = pnand %p230_p13, %p227_p12 }
  0x61   :  { %235 = shalt.err (!%p232_p0)
}
  0x62   :  { %95 = dma.vmem_to_hbm [thread:$0]  %s90_s7, 256, %s351_s3, [#allocation8], %s248_s4, %s248_s4, %s249_s5  }
  0x63   :  { %244 = dma.done.wait [#allocation8], 256  }
  0x64   :  { %245 = vsyncadd [#allocation8], 4294967040 }
  0x65   :  { %99 = vsyncpa [#allocation7], 1 }
  0x66   :  { %100 = vsyncpa [#allocation8], 1 }
  0x67   :  { %101 = vsyncmov [#allocation3] }
  0x6a   :  { %s102_s17 = vpop.sfrf %101 }
  0x6b   :  { %p123_p1 = scmp.ne.s32.totalorder %s102_s17, 0 }
  0x6d   :  { %106 = shalt.err (%p123_p1)  }
  0x6e   :  { %108 = vsyncmov [#allocation3 + $0x1] }
  0x71   :  { %s109_s18 = vpop.sfrf %108 }
  0x72   :  { %p124_p2 = scmp.ne.s32.totalorder %s109_s18, 0 }
  0x74   :  { %113 = shalt.err (%p124_p2)  }

</bundles_post_ra>
